<compile_context>
chip_gen: v6e
topology: v6e:2x2x1
jax: 0.10.0
libtpu: 0.0.40
codegen_flags: <defaults>
</compile_context>

<pallas_src>
import functools
import math

import numpy as np
import jax
import jax.numpy as jnp
from jax.experimental import pallas as pl
from jax.experimental.pallas import tpu as pltpu


_LANE = 128


def _round_up(x, m):
  return ((x + m - 1) // m) * m


def _pick_batch_tile(batch, cap):
  """Largest batch tile <= cap; multiples of 32 cover f32/bf16 sublane packing."""
  if batch <= cap:
    return batch
  return max(32, (cap // 32) * 32)


@functools.lru_cache(maxsize=1)
def _vmem_limit_bytes():
  # ~75% of physical VMEM: ~96 MiB on v5e/v6e (128 MiB), ~48 MiB on v7x (64 MiB).
  try:
    cap = int(pltpu.get_tpu_info().vmem_capacity_bytes)
  except Exception:
    cap = 64 * 1024 * 1024
  return int(cap * 3 // 4)


# ---------------------------------------------------------------------------
# Fully fused DLRM kernel: bottom MLP + self interaction + triu + top MLP.
# Ref order: dense, embed, (bot_w, bot_b)*nb, w1_bot, w1_triu, b1,
#            (top_w, top_b)*(nt-1), out, feat_scratch, triu_scratch.
# ---------------------------------------------------------------------------
def _dlrm_fused_kernel(*refs, num_bot, num_top, embed_dim, num_feat_bot,
                       compute_dtype):
  cd = compute_dtype
  dense_ref, embed_ref = refs[0], refs[1]
  pos = 2
  bot_refs = refs[pos:pos + 2 * num_bot]
  pos += 2 * num_bot
  w1_bot_ref, w1_triu_ref, b1_ref = refs[pos], refs[pos + 1], refs[pos + 2]
  pos += 3
  top_refs = refs[pos:pos + 2 * (num_top - 1)]
  pos += 2 * (num_top - 1)
  out_ref = refs[pos]
  feat_s, triu_s = refs[pos + 1], refs[pos + 2]

  # ---- Bottom MLP (accumulate f32, carry activations in compute dtype). ----
  h = dense_ref[...].astype(cd)
  for l in range(num_bot):
    h = jnp.dot(h, bot_refs[2 * l][...], preferred_element_type=jnp.float32)
    h = jnp.maximum(h + bot_refs[2 * l + 1][...], 0.0).astype(cd)
  bot_out = h                                        # [tile_b, d0], cd

  tile_b = bot_out.shape[0]
  if num_feat_bot == 1:
    f_bot = bot_out[:, None, :]
  else:
    f_bot = bot_out.reshape(tile_b, num_feat_bot, embed_dim)

  # ---- Feature stack assembled in VMEM scratch (no HBM concat). ----
  feat_s[:, :num_feat_bot, :] = f_bot
  feat_s[:, num_feat_bot:, :] = embed_ref[...].astype(cd)
  feats = feat_s[...]                                # [tile_b, F, E], cd

  # ---- Self interaction on the MXU; never leaves VMEM. ----
  xact = jnp.einsum("bfe,bge->bfg", feats, feats,
                    preferred_element_type=jnp.float32)  # [tile_b, F, F]

  # ---- In-VMEM triu gather: row i contributes the lane slice [i, i:]. ----
  num_feat = feats.shape[1]
  off = 0
  for i in range(num_feat):
    width = num_feat - i
    triu_s[:, off:off + width] = xact[:, i, i:].astype(cd)
    off += width
  xtriu = triu_s[...]                                # [tile_b, F*(F+1)/2], cd

  # ---- Top MLP; first layer = bot part + triu part (exact reassociation). ----
  h = (jnp.dot(bot_out, w1_bot_ref[...], preferred_element_type=jnp.float32)
       + jnp.dot(xtriu, w1_triu_ref[...], preferred_element_type=jnp.float32)
       + b1_ref[...])
  if num_top > 1:
    h = jnp.maximum(h, 0.0).astype(cd)
  for l in range(num_top - 1):
    h = jnp.dot(h, top_refs[2 * l][...], preferred_element_type=jnp.float32)
    h = h + top_refs[2 * l + 1][...]
    if l < num_top - 2:
      h = jnp.maximum(h, 0.0).astype(cd)

  out_ref[...] = h.astype(out_ref.dtype)


# ---------------------------------------------------------------------------
# Parameter construction + one-time prep (hoisted out of the forward path).
# ---------------------------------------------------------------------------
def init_params(key, num_dense_features, mlp_bottom_dims, mlp_top_dims,
                vocab_sizes, embed_dim, num_sparse_features):
  keys = iter(jax.random.split(key, 64))
  params = {"bot_w": [], "bot_b": [], "top_w": [], "top_b": []}

  in_dim = num_dense_features
  for out_dim in mlp_bottom_dims:
    std_w = math.sqrt(2.0 / (in_dim + out_dim))
    std_b = math.sqrt(1.0 / out_dim)
    params["bot_w"].append(
        std_w * jax.random.normal(next(keys), (in_dim, out_dim), jnp.float32))
    params["bot_b"].append(
        std_b * jax.random.normal(next(keys), (out_dim,), jnp.float32))
    in_dim = out_dim

  num_features = mlp_bottom_dims[-1] // embed_dim + num_sparse_features
  num_triu = num_features * (num_features + 1) // 2
  in_dim = mlp_bottom_dims[-1] + num_triu
  for out_dim in mlp_top_dims:
    std_w = math.sqrt(2.0 / (in_dim + out_dim))
    std_b = math.sqrt(1.0 / out_dim)
    params["top_w"].append(
        std_w * jax.random.normal(next(keys), (in_dim, out_dim), jnp.float32))
    params["top_b"].append(
        std_b * jax.random.normal(next(keys), (out_dim,), jnp.float32))
    in_dim = out_dim

  total_vocab = int(sum(vocab_sizes))
  table = jax.random.uniform(next(keys), (total_vocab, embed_dim), jnp.float32)
  vs = jnp.asarray(vocab_sizes, jnp.int32)
  scale = jnp.repeat(1.0 / jnp.sqrt(vs.astype(jnp.float32)), vs,
                     total_repeat_length=total_vocab)[:, None]
  params["embedding"] = scale * table
  return params


def prepare_params(params, compute_dtype=jnp.bfloat16):
  """One-time weight prep: cast, split W1, pad final layer to 128 lanes."""
  cd = compute_dtype
  bot_w = [w.astype(cd) for w in params["bot_w"]]
  bot_b = [b.reshape(1, -1).astype(jnp.float32) for b in params["bot_b"]]
  top_w = [w.astype(cd) for w in params["top_w"]]
  top_b = [b.reshape(1, -1).astype(jnp.float32) for b in params["top_b"]]

  out_dim = top_w[-1].shape[1]
  out_pad = _round_up(out_dim, _LANE)
  if out_pad != out_dim:
    pad = out_pad - out_dim
    top_w[-1] = jnp.pad(top_w[-1], ((0, 0), (0, pad)))
    top_b[-1] = jnp.pad(top_b[-1], ((0, 0), (0, pad)))

  d0 = bot_w[-1].shape[1]
  w1 = top_w[0]
  return {
      "bot_w": bot_w, "bot_b": bot_b,
      "top_w1_bot": w1[:d0], "top_w1_triu": w1[d0:],
      "top_w_rest": top_w[1:], "top_b": top_b,
      "embedding": params["embedding"].astype(cd),
  }


# ---------------------------------------------------------------------------
# Forward pass (prepped params -> logits)
# ---------------------------------------------------------------------------
def dlrm_forward(prepped, dense_x, cat_x, vocab_sizes, embed_dim, out_dim,
                 tile_b_cap=1024):
  batch = dense_x.shape[0]
  num_sparse = cat_x.shape[1]
  cd = prepped["bot_w"][0].dtype

  # Embedding gather.
  # TODO(synk): an in-kernel gather (scalar-prefetched indices + per-row DMAs)
  # would need ~B*26 tiny DMAs per tile; XLA's fused gather handles this
  # data-dependent access pattern better, so it stays here.
  offsets = np.concatenate(
      [[0], np.cumsum(np.asarray(vocab_sizes[:-1], np.int64))]).astype(np.int32)
  idx = (cat_x.astype(jnp.int32) + jnp.asarray(offsets)[None, :]).reshape(-1)
  embed_feats = jnp.take(prepped["embedding"], idx, axis=0)
  embed_feats = embed_feats.reshape(batch, num_sparse, embed_dim)

  bot_w, bot_b = prepped["bot_w"], prepped["bot_b"]
  w1_bot, w1_triu = prepped["top_w1_bot"], prepped["top_w1_triu"]
  top_w_rest, top_b = prepped["top_w_rest"], prepped["top_b"]
  num_bot, num_top = len(bot_w), len(top_b)
  d0 = w1_bot.shape[0]
  num_feat_bot = d0 // embed_dim
  num_feat = num_feat_bot + num_sparse
  num_triu = w1_triu.shape[0]
  assert num_triu == num_feat * (num_feat + 1) // 2
  out_pad = (top_w_rest[-1] if top_w_rest else w1_bot).shape[1]

  args = [dense_x, embed_feats]
  for w, b in zip(bot_w, bot_b):
    args += [w, b]
  args += [w1_bot, w1_triu, top_b[0]]
  for w, b in zip(top_w_rest, top_b[1:]):
    args += [w, b]

  tile_b = _pick_batch_tile(batch, tile_b_cap)
  grid = (pl.cdiv(batch, tile_b),)

  in_specs = [
      pl.BlockSpec((tile_b, dense_x.shape[1]), lambda i: (i, 0)),
      pl.BlockSpec((tile_b, num_sparse, embed_dim), lambda i: (i, 0, 0)),
  ]
  # Weights / biases: whole-array blocks, constant index maps -> fetched once
  # and VMEM-resident across grid steps.
  # TODO(synk): pipeline_mode=pl.Buffered(1) would single-buffer these and free
  # ~half the resident-weight VMEM, mainly useful on v7x's 64 MiB budget.
  in_specs += [pl.BlockSpec(a.shape, lambda i: (0, 0)) for a in args[2:]]

  # Cost estimate.
  flops = 0
  prev = dense_x.shape[1]
  for w in bot_w:
    flops += 2 * batch * prev * w.shape[1]
    prev = w.shape[1]
  flops += 2 * batch * num_feat * num_feat * embed_dim
  prev = d0 + num_triu
  for w in [w1_bot] + list(top_w_rest):
    flops += 2 * batch * prev * w.shape[1]
    prev = w.shape[1]
  bytes_accessed = sum(int(np.prod(a.shape)) * a.dtype.itemsize for a in args)
  bytes_accessed += batch * out_pad * 4

  kernel = functools.partial(
      _dlrm_fused_kernel, num_bot=num_bot, num_top=num_top,
      embed_dim=embed_dim, num_feat_bot=num_feat_bot, compute_dtype=cd)

  out = pl.pallas_call(
      kernel,
      grid=grid,
      in_specs=in_specs,
      out_specs=pl.BlockSpec((tile_b, out_pad), lambda i: (i, 0)),
      out_shape=jax.ShapeDtypeStruct((batch, out_pad), jnp.float32),
      scratch_shapes=[
          pltpu.VMEM((tile_b, num_feat, embed_dim), cd),   # feature stack
          pltpu.VMEM((tile_b, num_triu), cd),              # triu of x @ x^T
      ],
      compiler_params=pltpu.CompilerParams(
          dimension_semantics=("parallel",),
          vmem_limit_bytes=_vmem_limit_bytes()),
      cost_estimate=pl.CostEstimate(
          flops=flops, transcendentals=0, bytes_accessed=bytes_accessed),
  )(*args)

  return out[:, :out_dim]


# ---------------------------------------------------------------------------
# Pure-JAX reference (mirrors DlrmSmall.forward; compute_dtype mimics the
# kernel's mixed precision when set to bf16, and is the exact original f32
# semantics when set to f32).
# ---------------------------------------------------------------------------
def dlrm_reference(params, dense_x, cat_x, vocab_sizes, embed_dim,
                   compute_dtype=jnp.float32):
  cd = compute_dtype
  h = dense_x
  for w, b in zip(params["bot_w"], params["bot_b"]):
    h = jnp.dot(h.astype(cd), w.astype(cd),
                preferred_element_type=jnp.float32) + b
    h = jnp.maximum(h, 0.0)
  bot_out = h

  batch = bot_out.shape[0]
  feats = bot_out.reshape(batch, -1, embed_dim)
  offsets = np.concatenate(
      [[0], np.cumsum(np.asarray(vocab_sizes[:-1], np.int64))]).astype(np.int32)
  idx = (cat_x.astype(jnp.int32) + jnp.asarray(offsets)[None, :]).reshape(-1)
  emb = jnp.take(params["embedding"], idx, axis=0).reshape(batch, -1, embed_dim)
  feats = jnp.concatenate([feats, emb], axis=1).astype(cd)

  xact = jnp.einsum("bfe,bge->bfg", feats, feats,
                    preferred_element_type=jnp.float32)
  num_feat = feats.shape[1]
  iu0, iu1 = np.triu_indices(num_feat)
  xtriu = xact[:, iu0, iu1]
  top_in = jnp.concatenate([bot_out, xtriu], axis=-1)

  h = top_in
  n = len(params["top_w"])
  for i, (w, b) in enumerate(zip(params["top_w"], params["top_b"])):
    h = jnp.dot(h.astype(cd), w.astype(cd),
                preferred_element_type=jnp.float32) + b
    if i < n - 1:
      h = jnp.maximum(h, 0.0)
  return h


# ---------------------------------------------------------------------------
if __name__ == "__main__":
  # Small config consistent with DlrmSmall's structure
  # (bottom MLP output dim equals embed_dim, as in the real config).
  batch = 8
  num_dense_features = 13
  vocab_sizes = (20, 30, 40, 50)
  num_sparse_features = len(vocab_sizes)
  embed_dim = 16
  mlp_bottom_dims = (32, 16)
  mlp_top_dims = (64, 32, 1)

  key = jax.random.PRNGKey(0)
  k_param, k_dense, k_cat = jax.random.split(key, 3)

  params = init_params(k_param, num_dense_features, mlp_bottom_dims,
                       mlp_top_dims, vocab_sizes, embed_dim,
                       num_sparse_features)

  dense_x = jax.random.normal(k_dense, (batch, num_dense_features), jnp.float32)
  cat_keys = jax.random.split(k_cat, num_sparse_features)
  cat_x = jnp.stack(
      [jax.random.randint(k, (batch,), 0, v)
       for k, v in zip(cat_keys, vocab_sizes)], axis=1).astype(jnp.int32)

  fwd = jax.jit(lambda p, d, c: dlrm_forward(
      p, d, c, vocab_sizes, embed_dim, mlp_top_dims[-1]))

  # f32 path: exact check against the f32 reference.
  prep_f32 = prepare_params(params, compute_dtype=jnp.float32)
  logits_f32 = jax.block_until_ready(fwd(prep_f32, dense_x, cat_x))
  ref_f32 = jax.block_until_ready(
      dlrm_reference(params, dense_x, cat_x, vocab_sizes, embed_dim,
                     jnp.float32))
  assert logits_f32.shape == (batch, mlp_top_dims[-1]), logits_f32.shape
  assert jnp.allclose(logits_f32, ref_f32, rtol=1e-3, atol=1e-3), (
      "Pallas f32 output mismatch vs JAX reference")

  # bf16 path (production default): check against a bf16 mixed-precision mimic.
  prep_bf16 = prepare_params(params, compute_dtype=jnp.bfloat16)
  logits_bf16 = jax.block_until_ready(fwd(prep_bf16, dense_x, cat_x))
  ref_bf16 = jax.block_until_ready(
      dlrm_reference(params, dense_x, cat_x, vocab_sizes, embed_dim,
                     jnp.bfloat16))
  assert logits_bf16.shape == (batch, mlp_top_dims[-1]), logits_bf16.shape
  assert jnp.allclose(logits_bf16, ref_bf16, rtol=2e-2, atol=2e-2), (
      "Pallas bf16 output mismatch vs bf16 JAX reference")

  print("KERNEL_OK")
</pallas_src>

<mosaic_0001>
module attributes {stable_mosaic.version = 11 : i64} {
  func.func @_dlrm_fused_kernel(%arg0: i32, %arg1: memref<8x13xf32, #tpu.memory_space<vmem>>, %arg2: memref<8x4x16xf32, #tpu.memory_space<vmem>>, %arg3: memref<13x32xf32, #tpu.memory_space<vmem>>, %arg4: memref<1x32xf32, #tpu.memory_space<vmem>>, %arg5: memref<32x16xf32, #tpu.memory_space<vmem>>, %arg6: memref<1x16xf32, #tpu.memory_space<vmem>>, %arg7: memref<16x64xf32, #tpu.memory_space<vmem>>, %arg8: memref<15x64xf32, #tpu.memory_space<vmem>>, %arg9: memref<1x64xf32, #tpu.memory_space<vmem>>, %arg10: memref<64x32xf32, #tpu.memory_space<vmem>>, %arg11: memref<1x32xf32, #tpu.memory_space<vmem>>, %arg12: memref<32x128xf32, #tpu.memory_space<vmem>>, %arg13: memref<1x128xf32, #tpu.memory_space<vmem>>, %arg14: memref<8x128xf32, #tpu.memory_space<vmem>>, %arg15: memref<8x5x16xf32, #tpu.memory_space<vmem>>, %arg16: memref<8x15xf32, #tpu.memory_space<vmem>>) attributes {dimension_semantics = [#tpu.dimension_semantics<parallel>], iteration_bounds = array<i64: 1>, scalar_prefetch = 0 : i64, scratch_operands = 2 : i64, tpu.core_type = #tpu.core_type<tc>, window_params = [{transform_indices = @transform_0, window_bounds = array<i64: 8, 13>}, {transform_indices = @transform_1, window_bounds = array<i64: 8, 4, 16>}, {pipeline_mode = #tpu.pipeline_mode<synchronous>, transform_indices = @transform_2, window_bounds = array<i64: 13, 32>}, {pipeline_mode = #tpu.pipeline_mode<synchronous>, transform_indices = @transform_3, window_bounds = array<i64: 1, 32>}, {pipeline_mode = #tpu.pipeline_mode<synchronous>, transform_indices = @transform_4, window_bounds = array<i64: 32, 16>}, {pipeline_mode = #tpu.pipeline_mode<synchronous>, transform_indices = @transform_5, window_bounds = array<i64: 1, 16>}, {pipeline_mode = #tpu.pipeline_mode<synchronous>, transform_indices = @transform_6, window_bounds = array<i64: 16, 64>}, {pipeline_mode = #tpu.pipeline_mode<synchronous>, transform_indices = @transform_7, window_bounds = array<i64: 15, 64>}, {pipeline_mode = #tpu.pipeline_mode<synchronous>, transform_indices = @transform_8, window_bounds = array<i64: 1, 64>}, {pipeline_mode = #tpu.pipeline_mode<synchronous>, transform_indices = @transform_9, window_bounds = array<i64: 64, 32>}, {pipeline_mode = #tpu.pipeline_mode<synchronous>, transform_indices = @transform_10, window_bounds = array<i64: 1, 32>}, {pipeline_mode = #tpu.pipeline_mode<synchronous>, transform_indices = @transform_11, window_bounds = array<i64: 32, 128>}, {pipeline_mode = #tpu.pipeline_mode<synchronous>, transform_indices = @transform_12, window_bounds = array<i64: 1, 128>}, {transform_indices = @transform_13, window_bounds = array<i64: 8, 128>}]} {
    %c0 = arith.constant 0 : index
    %c0_0 = arith.constant 0 : index
    %0 = vector.load %arg1[%c0, %c0_0] : memref<8x13xf32, #tpu.memory_space<vmem>>, vector<8x13xf32>
    %c0_1 = arith.constant 0 : index
    %c0_2 = arith.constant 0 : index
    %1 = vector.load %arg3[%c0_1, %c0_2] : memref<13x32xf32, #tpu.memory_space<vmem>>, vector<13x32xf32>
    %cst = arith.constant dense<0.000000e+00> : vector<8x32xf32>
    %2 = tpu.matmul %0, %1, %cst {dimension_numbers = #tpu.dot_dimension_numbers<[1], [0], [0], [1], [0, 0, 1, 1], [], []>} : vector<8x13xf32>, vector<13x32xf32>, vector<8x32xf32> -> vector<8x32xf32>
    %c0_3 = arith.constant 0 : index
    %c0_4 = arith.constant 0 : index
    %3 = vector.load %arg4[%c0_3, %c0_4] : memref<1x32xf32, #tpu.memory_space<vmem>>, vector<1x32xf32>
    %4 = vector.broadcast %3 : vector<1x32xf32> to vector<8x32xf32>
    %5 = arith.addf %2, %4 : vector<8x32xf32>
    %cst_5 = arith.constant 0.000000e+00 : f32
    %6 = vector.broadcast %cst_5 : f32 to vector<8x32xf32>
    %7 = arith.maximumf %5, %6 : vector<8x32xf32>
    %c0_6 = arith.constant 0 : index
    %c0_7 = arith.constant 0 : index
    %8 = vector.load %arg5[%c0_6, %c0_7] : memref<32x16xf32, #tpu.memory_space<vmem>>, vector<32x16xf32>
    %cst_8 = arith.constant dense<0.000000e+00> : vector<8x16xf32>
    %9 = tpu.matmul %7, %8, %cst_8 {dimension_numbers = #tpu.dot_dimension_numbers<[1], [0], [0], [1], [0, 0, 1, 1], [], []>} : vector<8x32xf32>, vector<32x16xf32>, vector<8x16xf32> -> vector<8x16xf32>
    %c0_9 = arith.constant 0 : index
    %c0_10 = arith.constant 0 : index
    %10 = vector.load %arg6[%c0_9, %c0_10] : memref<1x16xf32, #tpu.memory_space<vmem>>, vector<1x16xf32>
    %11 = vector.broadcast %10 : vector<1x16xf32> to vector<8x16xf32>
    %12 = arith.addf %9, %11 : vector<8x16xf32>
    %cst_11 = arith.constant 0.000000e+00 : f32
    %13 = vector.broadcast %cst_11 : f32 to vector<8x16xf32>
    %14 = arith.maximumf %12, %13 : vector<8x16xf32>
    %15 = vector.shape_cast %14 : vector<8x16xf32> to vector<8x1x16xf32>
    %c0_12 = arith.constant 0 : index
    %c0_13 = arith.constant 0 : index
    %c0_14 = arith.constant 0 : index
    %16 = vector.load %arg15[%c0_12, %c0_13, %c0_14] : memref<8x5x16xf32, #tpu.memory_space<vmem>>, vector<8x1x16xf32>
    tpu.vector_store %arg15[%c0_12, %c0_13, %c0_14], %15 {strides = array<i32>} : memref<8x5x16xf32, #tpu.memory_space<vmem>>, vector<8x1x16xf32>,
    %c0_15 = arith.constant 0 : index
    %c0_16 = arith.constant 0 : index
    %c0_17 = arith.constant 0 : index
    %17 = vector.load %arg2[%c0_15, %c0_16, %c0_17] : memref<8x4x16xf32, #tpu.memory_space<vmem>>, vector<8x4x16xf32>
    %c0_18 = arith.constant 0 : index
    %c1 = arith.constant 1 : index
    %c0_19 = arith.constant 0 : index
    %18 = vector.load %arg15[%c0_18, %c1, %c0_19] : memref<8x5x16xf32, #tpu.memory_space<vmem>>, vector<8x4x16xf32>
    tpu.vector_store %arg15[%c0_18, %c1, %c0_19], %17 {strides = array<i32>} : memref<8x5x16xf32, #tpu.memory_space<vmem>>, vector<8x4x16xf32>,
    %c0_20 = arith.constant 0 : index
    %c0_21 = arith.constant 0 : index
    %c0_22 = arith.constant 0 : index
    %19 = vector.load %arg15[%c0_20, %c0_21, %c0_22] : memref<8x5x16xf32, #tpu.memory_space<vmem>>, vector<8x5x16xf32>
    "tpu.trace_start"() <{level = 10 : i32, message = "bfe,bge->bfg"}> : () -> ()
    %cst_23 = arith.constant dense<0.000000e+00> : vector<8x5x5xf32>
    %20 = tpu.matmul %19, %19, %cst_23 {dimension_numbers = #tpu.dot_dimension_numbers<[2], [2], [1], [1], [0, 0, 0, 1, 1, 1], [0], [0]>} : vector<8x5x16xf32>, vector<8x5x16xf32>, vector<8x5x5xf32> -> vector<8x5x5xf32>
    "tpu.trace_stop"() : () -> ()
    %21 = vector.extract_strided_slice %20 {offsets = [0, 0, 0], sizes = [8, 1, 5], strides = [1, 1, 1]} : vector<8x5x5xf32> to vector<8x1x5xf32>
    %22 = vector.shape_cast %21 : vector<8x1x5xf32> to vector<8x5xf32>
    %c0_24 = arith.constant 0 : index
    %c0_25 = arith.constant 0 : index
    %23 = vector.load %arg16[%c0_24, %c0_25] : memref<8x15xf32, #tpu.memory_space<vmem>>, vector<8x5xf32>
    tpu.vector_store %arg16[%c0_24, %c0_25], %22 {strides = array<i32>} : memref<8x15xf32, #tpu.memory_space<vmem>>, vector<8x5xf32>,
    %24 = vector.extract_strided_slice %20 {offsets = [0, 1, 1], sizes = [8, 1, 4], strides = [1, 1, 1]} : vector<8x5x5xf32> to vector<8x1x4xf32>
    %25 = vector.shape_cast %24 : vector<8x1x4xf32> to vector<8x4xf32>
    %c0_26 = arith.constant 0 : index
    %c5 = arith.constant 5 : index
    %26 = vector.load %arg16[%c0_26, %c5] : memref<8x15xf32, #tpu.memory_space<vmem>>, vector<8x4xf32>
    tpu.vector_store %arg16[%c0_26, %c5], %25 {strides = array<i32>} : memref<8x15xf32, #tpu.memory_space<vmem>>, vector<8x4xf32>,
    %27 = vector.extract_strided_slice %20 {offsets = [0, 2, 2], sizes = [8, 1, 3], strides = [1, 1, 1]} : vector<8x5x5xf32> to vector<8x1x3xf32>
    %28 = vector.shape_cast %27 : vector<8x1x3xf32> to vector<8x3xf32>
    %c0_27 = arith.constant 0 : index
    %c9 = arith.constant 9 : index
    %29 = vector.load %arg16[%c0_27, %c9] : memref<8x15xf32, #tpu.memory_space<vmem>>, vector<8x3xf32>
    tpu.vector_store %arg16[%c0_27, %c9], %28 {strides = array<i32>} : memref<8x15xf32, #tpu.memory_space<vmem>>, vector<8x3xf32>,
    %30 = vector.extract_strided_slice %20 {offsets = [0, 3, 3], sizes = [8, 1, 2], strides = [1, 1, 1]} : vector<8x5x5xf32> to vector<8x1x2xf32>
    %31 = vector.shape_cast %30 : vector<8x1x2xf32> to vector<8x2xf32>
    %c0_28 = arith.constant 0 : index
    %c12 = arith.constant 12 : index
    %32 = vector.load %arg16[%c0_28, %c12] : memref<8x15xf32, #tpu.memory_space<vmem>>, vector<8x2xf32>
    tpu.vector_store %arg16[%c0_28, %c12], %31 {strides = array<i32>} : memref<8x15xf32, #tpu.memory_space<vmem>>, vector<8x2xf32>,
    %33 = vector.extract_strided_slice %20 {offsets = [0, 4, 4], sizes = [8, 1, 1], strides = [1, 1, 1]} : vector<8x5x5xf32> to vector<8x1x1xf32>
    %34 = vector.shape_cast %33 : vector<8x1x1xf32> to vector<8x1xf32>
    %c0_29 = arith.constant 0 : index
    %c14 = arith.constant 14 : index
    %35 = vector.load %arg16[%c0_29, %c14] : memref<8x15xf32, #tpu.memory_space<vmem>>, vector<8x1xf32>
    tpu.vector_store %arg16[%c0_29, %c14], %34 {strides = array<i32>} : memref<8x15xf32, #tpu.memory_space<vmem>>, vector<8x1xf32>,
    %c0_30 = arith.constant 0 : index
    %c0_31 = arith.constant 0 : index
    %36 = vector.load %arg16[%c0_30, %c0_31] : memref<8x15xf32, #tpu.memory_space<vmem>>, vector<8x15xf32>
    %c0_32 = arith.constant 0 : index
    %c0_33 = arith.constant 0 : index
    %37 = vector.load %arg7[%c0_32, %c0_33] : memref<16x64xf32, #tpu.memory_space<vmem>>, vector<16x64xf32>
    %cst_34 = arith.constant dense<0.000000e+00> : vector<8x64xf32>
    %38 = tpu.matmul %14, %37, %cst_34 {dimension_numbers = #tpu.dot_dimension_numbers<[1], [0], [0], [1], [0, 0, 1, 1], [], []>} : vector<8x16xf32>, vector<16x64xf32>, vector<8x64xf32> -> vector<8x64xf32>
    %c0_35 = arith.constant 0 : index
    %c0_36 = arith.constant 0 : index
    %39 = vector.load %arg8[%c0_35, %c0_36] : memref<15x64xf32, #tpu.memory_space<vmem>>, vector<15x64xf32>
    %cst_37 = arith.constant dense<0.000000e+00> : vector<8x64xf32>
    %40 = tpu.matmul %36, %39, %cst_37 {dimension_numbers = #tpu.dot_dimension_numbers<[1], [0], [0], [1], [0, 0, 1, 1], [], []>} : vector<8x15xf32>, vector<15x64xf32>, vector<8x64xf32> -> vector<8x64xf32>
    %41 = arith.addf %38, %40 : vector<8x64xf32>
    %c0_38 = arith.constant 0 : index
    %c0_39 = arith.constant 0 : index
    %42 = vector.load %arg9[%c0_38, %c0_39] : memref<1x64xf32, #tpu.memory_space<vmem>>, vector<1x64xf32>
    %43 = vector.broadcast %42 : vector<1x64xf32> to vector<8x64xf32>
    %44 = arith.addf %41, %43 : vector<8x64xf32>
    %cst_40 = arith.constant 0.000000e+00 : f32
    %45 = vector.broadcast %cst_40 : f32 to vector<8x64xf32>
    %46 = arith.maximumf %44, %45 : vector<8x64xf32>
    %c0_41 = arith.constant 0 : index
    %c0_42 = arith.constant 0 : index
    %47 = vector.load %arg10[%c0_41, %c0_42] : memref<64x32xf32, #tpu.memory_space<vmem>>, vector<64x32xf32>
    %cst_43 = arith.constant dense<0.000000e+00> : vector<8x32xf32>
    %48 = tpu.matmul %46, %47, %cst_43 {dimension_numbers = #tpu.dot_dimension_numbers<[1], [0], [0], [1], [0, 0, 1, 1], [], []>} : vector<8x64xf32>, vector<64x32xf32>, vector<8x32xf32> -> vector<8x32xf32>
    %c0_44 = arith.constant 0 : index
    %c0_45 = arith.constant 0 : index
    %49 = vector.load %arg11[%c0_44, %c0_45] : memref<1x32xf32, #tpu.memory_space<vmem>>, vector<1x32xf32>
    %50 = vector.broadcast %49 : vector<1x32xf32> to vector<8x32xf32>
    %51 = arith.addf %48, %50 : vector<8x32xf32>
    %cst_46 = arith.constant 0.000000e+00 : f32
    %52 = vector.broadcast %cst_46 : f32 to vector<8x32xf32>
    %53 = arith.maximumf %51, %52 : vector<8x32xf32>
    %c0_47 = arith.constant 0 : index
    %c0_48 = arith.constant 0 : index
    %54 = vector.load %arg12[%c0_47, %c0_48] : memref<32x128xf32, #tpu.memory_space<vmem>>, vector<32x128xf32>
    %cst_49 = arith.constant dense<0.000000e+00> : vector<8x128xf32>
    %55 = tpu.matmul %53, %54, %cst_49 {dimension_numbers = #tpu.dot_dimension_numbers<[1], [0], [0], [1], [0, 0, 1, 1], [], []>} : vector<8x32xf32>, vector<32x128xf32>, vector<8x128xf32> -> vector<8x128xf32>
    %c0_50 = arith.constant 0 : index
    %c0_51 = arith.constant 0 : index
    %56 = vector.load %arg13[%c0_50, %c0_51] : memref<1x128xf32, #tpu.memory_space<vmem>>, vector<1x128xf32>
    %57 = vector.broadcast %56 : vector<1x128xf32> to vector<8x128xf32>
    %58 = arith.addf %55, %57 : vector<8x128xf32>
    %c0_52 = arith.constant 0 : index
    %c0_53 = arith.constant 0 : index
    %59 = vector.load %arg14[%c0_52, %c0_53] : memref<8x128xf32, #tpu.memory_space<vmem>>, vector<8x128xf32>
    tpu.vector_store %arg14[%c0_52, %c0_53], %58 {strides = array<i32>} : memref<8x128xf32, #tpu.memory_space<vmem>>, vector<8x128xf32>,
    return
  }
  func.func @transform_0(%arg0: i32) -> (i32, i32) {
    %c0_i32 = arith.constant 0 : i32
    %c0_i32_0 = arith.constant 0 : i32
    return %arg0, %c0_i32 : i32, i32
  }
  func.func @transform_1(%arg0: i32) -> (i32, i32, i32) {
    %c0_i32 = arith.constant 0 : i32
    %c0_i32_0 = arith.constant 0 : i32
    %c0_i32_1 = arith.constant 0 : i32
    return %arg0, %c0_i32, %c0_i32_0 : i32, i32, i32
  }
  func.func @transform_2(%arg0: i32) -> (i32, i32) {
    %c0_i32 = arith.constant 0 : i32
    %c0_i32_0 = arith.constant 0 : i32
    %c0_i32_1 = arith.constant 0 : i32
    return %c0_i32, %c0_i32_0 : i32, i32
  }
  func.func @transform_3(%arg0: i32) -> (i32, i32) {
    %c0_i32 = arith.constant 0 : i32
    %c0_i32_0 = arith.constant 0 : i32
    %c0_i32_1 = arith.constant 0 : i32
    return %c0_i32, %c0_i32_0 : i32, i32
  }
  func.func @transform_4(%arg0: i32) -> (i32, i32) {
    %c0_i32 = arith.constant 0 : i32
    %c0_i32_0 = arith.constant 0 : i32
    %c0_i32_1 = arith.constant 0 : i32
    return %c0_i32, %c0_i32_0 : i32, i32
  }
  func.func @transform_5(%arg0: i32) -> (i32, i32) {
    %c0_i32 = arith.constant 0 : i32
    %c0_i32_0 = arith.constant 0 : i32
    %c0_i32_1 = arith.constant 0 : i32
    return %c0_i32, %c0_i32_0 : i32, i32
  }
  func.func @transform_6(%arg0: i32) -> (i32, i32) {
    %c0_i32 = arith.constant 0 : i32
    %c0_i32_0 = arith.constant 0 : i32
    %c0_i32_1 = arith.constant 0 : i32
    return %c0_i32, %c0_i32_0 : i32, i32
  }
  func.func @transform_7(%arg0: i32) -> (i32, i32) {
    %c0_i32 = arith.constant 0 : i32
    %c0_i32_0 = arith.constant 0 : i32
    %c0_i32_1 = arith.constant 0 : i32
    return %c0_i32, %c0_i32_0 : i32, i32
  }
  func.func @transform_8(%arg0: i32) -> (i32, i32) {
    %c0_i32 = arith.constant 0 : i32
    %c0_i32_0 = arith.constant 0 : i32
    %c0_i32_1 = arith.constant 0 : i32
    return %c0_i32, %c0_i32_0 : i32, i32
  }
  func.func @transform_9(%arg0: i32) -> (i32, i32) {
    %c0_i32 = arith.constant 0 : i32
    %c0_i32_0 = arith.constant 0 : i32
    %c0_i32_1 = arith.constant 0 : i32
    return %c0_i32, %c0_i32_0 : i32, i32
  }
  func.func @transform_10(%arg0: i32) -> (i32, i32) {
    %c0_i32 = arith.constant 0 : i32
    %c0_i32_0 = arith.constant 0 : i32
    %c0_i32_1 = arith.constant 0 : i32
    return %c0_i32, %c0_i32_0 : i32, i32
  }
  func.func @transform_11(%arg0: i32) -> (i32, i32) {
    %c0_i32 = arith.constant 0 : i32
    %c0_i32_0 = arith.constant 0 : i32
    %c0_i32_1 = arith.constant 0 : i32
    return %c0_i32, %c0_i32_0 : i32, i32
  }
  func.func @transform_12(%arg0: i32) -> (i32, i32) {
    %c0_i32 = arith.constant 0 : i32
    %c0_i32_0 = arith.constant 0 : i32
    %c0_i32_1 = arith.constant 0 : i32
    return %c0_i32, %c0_i32_0 : i32, i32
  }
  func.func @transform_13(%arg0: i32) -> (i32, i32) {
    %c0_i32 = arith.constant 0 : i32
    %c0_i32_0 = arith.constant 0 : i32
    return %arg0, %c0_i32 : i32, i32
  }
}

</mosaic_0001>

<bundles_post_ra>
// kernel: _lambda_.1
= control target key start
LH: loop header
LB: loop body
LE: loop exit
PB: predicated region body
PF: predicated region fallthrough
CT: control target
= control target key end

     0   :  { %vm58_vm0 = vcmask 1044480   ;;  %v1517_v0 = vmov 0.0   ;;  %vm1518_vm1 = vmmov 0   ;;  %vm54_vm2 = vcmask 105472   ;;  %s1521_s21 = smov 7   ;;  %s1839_s2 = inlined_call_operand.vmem [shape: f32[13,32], index: 2, kind: input, shape index: {}]   ;;  %s1840_s0 = inlined_call_operand.vmem [shape: f32[8,13], index: 0, kind: input, shape index: {}]   ;;  %s1841_s4 = inlined_call_operand.vmem [shape: f32[32,16], index: 4, kind: input, shape index: {}]   ;;  %s1842_s3 = inlined_call_operand.vmem [shape: f32[1,32], index: 3, kind: input, shape index: {}]   ;;  %s1843_s1 = inlined_call_operand.vmem [shape: f32[8,4,16], index: 1, kind: input, shape index: {}]   ;;  %s1844_s5 = inlined_call_operand.vmem [shape: f32[1,16], index: 5, kind: input, shape index: {}]   ;;  %s1845_s6 = inlined_call_operand.vmem [shape: f32[16,64], index: 6, kind: input, shape index: {}]   ;;  %s1846_s7 = inlined_call_operand.vmem [shape: f32[15,64], index: 7, kind: input, shape index: {}]   ;;  %s1847_s9 = inlined_call_operand.vmem [shape: f32[64,32], index: 9, kind: input, shape index: {}]   ;;  %s1848_s11 = inlined_call_operand.vmem [shape: f32[32,128], index: 11, kind: input, shape index: {}]   ;;  %s1849_s8 = inlined_call_operand.vmem [shape: f32[1,64], index: 8, kind: input, shape index: {}]   ;;  %s1850_s10 = inlined_call_operand.vmem [shape: f32[1,32], index: 10, kind: input, shape index: {}]   ;;  %s1851_s12 = inlined_call_operand.vmem [shape: f32[1,128], index: 12, kind: input, shape index: {}]   ;;  %s1852_s13 = inlined_call_operand.vmem [shape: f32[8,128], index: 13, kind: output, shape index: {}]  }
   0x1   :  { %1408 = vmatprep.subr.mxu0 %v1517_v0  ;;  %v46_v1 = vld [vmem:[%s1839_s2 + $0x8] sm:$0x1f]  ;;  %v45_v2 = vld [vmem:[%s1839_s2] sm:$0xff]  ;;  %1412 = vmatprep.mubr.msk.f32.mxu0 %vm1518_vm1, %v1517_v0  ;;  %v136_v4 = vld [vmem:[%s1841_s4 + $0x18] sm:$0xff]  ;;  %vm144_vm3 = vcmask 261120   ;;  %vm294_vm4 = vcmask 125952   ;;  %v224_v23 = vlaneseq }
   0x2   :  { %1409 = vmatpush3.msk.msra.mxu0 %vm58_vm0, %v46_v1  ;;  %v44_v3 = vld [vmem:[%s1840_s0] sm:$0xff]  ;;  %1415 = vmatprep.subr.mxu1 %v1517_v0  ;;  %v135_v5 = vld [vmem:[%s1841_s4 + $0x10] sm:$0xff]  ;;  %v134_v6 = vld [vmem:[%s1841_s4 + $0x8] sm:$0xff]  ;;  %v1519_v21 = vmov 1966171168   ;;  %vm277_vm5 = vcmask 122880  }
   0x3   :  { %1410 = vmatprep.subr.mxu0 %v1517_v0  ;;  %1416 = vmatpush3.msra.mxu1 %v136_v4  ;;  %v133_v7 = vld [vmem:[%s1841_s4] sm:$0xff]  ;;  %v288_v14 = vld [vmem:[%s1843_s1 + $0x8] sm:$0xf]  ;;  %v290_v16 = vld [vmem:[%s1843_s1 + $0x10] sm:$0xf]  ;;  %v222_v22 = vunpack.c.l.s4 %v1519_v21  ;;  %v225_v25 = vshrl.u32 %v224_v23, 7 }
   0x4   :  { %1411 = vmatpush3.msra.mxu0 %v45_v2  ;;  %1417 = vmatprep.subr.mxu1 %v1517_v0  ;;  %v1335_v8 = vld [vmem:[%s1842_s3] ss:$0 sm:$0xff]  ;;  %v287_v15 = vld [vmem:[%s1843_s1 + $0x4] sm:$0xf]  ;;  %297 = vst.msk [vmem:[#allocation2 + $0x11] sm:$0xf] %vm294_vm4, %v288_v14 }
   0x5   :  { %1413 = vmatmul.mubr.msk.f32.vlgmr.msra.gmra.mxu0 %vm54_vm2, %v44_v3  ;;  %1423 = vmatprep.mubr.msk.f32.mxu1 %vm1518_vm1, %v1517_v0  ;;  %v286_v13 = vld [vmem:[%s1843_s1] sm:$0xf]  ;;  %296 = vst.msk [vmem:[#allocation2 + $0x9] sm:$0xf] %vm294_vm4, %v287_v15  ;;  %299 = vst.msk [vmem:[#allocation2 + $0x21] sm:$0xf] %vm294_vm4, %v290_v16  ;;  %v223_v24 = vunpack.c.0.s8 %v222_v22 }
   0x6   :  { %1426 = vmatprep.subr.mxu0 %v1517_v0  ;;  %1428 = vmatprep.mubr.msk.f32.mxu0 %vm1518_vm1, %v1517_v0  ;;  %295 = vst.msk [vmem:[#allocation2 + $0x1] sm:$0xf] %vm294_vm4, %v286_v13  ;;  %v289_v17 = vld [vmem:[%s1843_s1 + $0xc] sm:$0xf]  ;;  %v292_v18 = vld [vmem:[%s1843_s1 + $0x18] sm:$0xf] }
   0x7   :  { %1418 = vmatpush3.msra.mxu1 %v135_v5  ;;  %v291_v19 = vld [vmem:[%s1843_s1 + $0x14] sm:$0xf]  ;;  %298 = vst.msk [vmem:[#allocation2 + $0x19] sm:$0xf] %vm294_vm4, %v289_v17  ;;  %301 = vst.msk [vmem:[#allocation2 + $0x31] sm:$0xf] %vm294_vm4, %v292_v18  ;;  %v226_v29 = vsub.s32 %v223_v24, %v225_v25 }
   0x8   :  { %1419 = vmatprep.subr.mxu1 %v1517_v0  ;;  %300 = vst.msk [vmem:[#allocation2 + $0x29] sm:$0xf] %vm294_vm4, %v291_v19  ;;  %v293_v20 = vld [vmem:[%s1843_s1 + $0x1c] sm:$0xf]  ;;  %v1338_v26 = vld [vmem:[%s1844_s5] ss:$0 sm:$0xff] }
   0x9   :  { %1420 = vmatpush3.msra.mxu1 %v134_v6  ;;  %302 = vst.msk [vmem:[#allocation2 + $0x39] sm:$0xf] %vm294_vm4, %v293_v20  ;;  %vm311_vm6 = vcmask 130048   ;;  %v994_v53 = vld [vmem:[%s1845_s6 + $0x8] sm:$0xff]  ;;  %v993_v54 = vld [vmem:[%s1845_s6] sm:$0xff]  ;;  %vm914_vm7 = vcmask 1044484  }
   0xa   :  { %1421 = vmatprep.subr.mxu1 %v1517_v0  ;;  %vm911_vm8 = vcmask 1043459   ;;  %vm908_vm9 = vcmask 1042434   ;;  %vm905_vm10 = vcmask 1041409   ;;  %vm917_vm11 = vcmask 1045509   ;;  %s1520_s6 = smov 9   ;;  %s1522_s3 = smov 4  }
   0xb   :  { %1422 = vmatpush3.msra.mxu1 %v133_v7  ;;  %vm920_vm12 = vcmask 1046534   ;;  %vm923_vm13 = vcmask 1047559   ;;  %vm1001_vm14 = vcmask 1046528   ;;  %vm926_vm15 = vcmask 39936  }
   0xc   :  { %1436 = vmatprep.subr.mxu1 %v1517_v0  ;;  %vm940_vm0 = vcmask 72745   ;;  %vm956_vm2 = vcmask 97354   ;;  %vm972_vm4 = vcmask 113763  }
  0xc5   :  { %v128_v9 = vpop.f32.mrf.mxu0 }
  0xc6   :  { %v129_v10 = vadd.f32 %v1335_v8, %v128_v9 }
  0xc7   :  { %v1414_v11 = vpop.f32.mrf.mxu0 }
  0xc8   :  { %v132_v12 = vmax.f32 %v129_v10, 0.0 }
  0xca   :  { %1424 = vmatmul.mubr.msk.f32.vlgmr.msra.gmra.mxu1 %vm144_vm3, %v132_v12 }
  0xcb   :  { %1438 = vmatprep.mubr.msk.f32.mxu1 %vm1518_vm1, %v1517_v0 }
 0x18a   :  { %v214_v27 = vpop.f32.mrf.mxu1 }
 0x18b   :  { %v215_v28 = vadd.f32 %v1338_v26, %v214_v27 }
 0x18c   :  { %v1425_v30 = vpop.f32.mrf.mxu1 }
 0x18d   :  { %v1662_v31 = vmax.f32 %v215_v28, 0.0 }
 0x18f   :  { %v220_v32 = vcombine.high %v1662_v31, %v1662_v31  ;;  %v227_v33 = vrot.slane %v1662_v31, %v226_v29 }
 0x191   :  { %v234_v34 = vrot.slane %v220_v32, %v226_v29  ;;  %v235_v35 = vcombine.high %v227_v33, %v227_v33  ;;  %v243_v36 = vrot.slane %v227_v33, %v226_v29  ;;  %v996_v33 = vld [vmem:[%s1846_s7 + $0x8] sm:$0x7f] }
 0x193   :  { %v236_v37 = vcombine.high %v234_v34, %v234_v34  ;;  %v250_v38 = vrot.slane %v234_v34, %v226_v29  ;;  %v257_v39 = vrot.slane %v235_v35, %v226_v29  ;;  %v265_v40 = vcombine.high %v243_v36, %v243_v36  ;;  %278 = vst.msk [vmem:[#allocation2] sm:$0x1] %vm277_vm5, %v243_v36  ;;  %v995_v34 = vld [vmem:[%s1846_s7] sm:$0xff]  ;;  %s1523_s7 = smov 10  }
 0x195   :  { %v264_v41 = vrot.slane %v236_v37, %v226_v29  ;;  %v266_v42 = vcombine.high %v250_v38, %v250_v38  ;;  %v267_v43 = vcombine.high %v257_v39, %v257_v39  ;;  %279 = vst.msk [vmem:[#allocation2 + $0x8] sm:$0x1] %vm277_vm5, %v257_v39  ;;  %280 = vst.msk [vmem:[#allocation2 + $0x10] sm:$0x1] %vm277_vm5, %v265_v40 }
 0x196   :  { %282 = vst.msk [vmem:[#allocation2 + $0x20] sm:$0x1] %vm277_vm5, %v250_v38 }
 0x197   :  { %v268_v44 = vcombine.high %v264_v41, %v264_v41  ;;  %281 = vst.msk [vmem:[#allocation2 + $0x18] sm:$0x1] %vm277_vm5, %v267_v43  ;;  %283 = vst.msk [vmem:[#allocation2 + $0x28] sm:$0x1] %vm277_vm5, %v264_v41 }
 0x198   :  { %284 = vst.msk [vmem:[#allocation2 + $0x30] sm:$0x1] %vm277_vm5, %v266_v42 }
 0x199   :  { %285 = vst.msk [vmem:[#allocation2 + $0x38] sm:$0x1] %vm277_vm5, %v268_v44  ;;  %vm942_vm5 = vcmask 65576  }
 0x19a   :  { %v303_v45 = vld [vmem:[#allocation2] sm:$0x1f] }
 0x19b   :  { %1427 = vmatpush3.xpose.msk.msra.mxu0 %vm311_vm6, %v303_v45 }
 0x19c   :  { %v305_v46 = vld [vmem:[#allocation2 + $0x10] sm:$0x1f]  ;;  %1431 = vmatprep.subr.mxu0 %v1517_v0  ;;  %v304_v47 = vld [vmem:[#allocation2 + $0x8] sm:$0x1f] }
 0x19d   :  { %1437 = vmatpush3.xpose.msk.msra.mxu1 %vm311_vm6, %v305_v46  ;;  %v307_v48 = vld [vmem:[#allocation2 + $0x20] sm:$0x1f] }
 0x19e   :  { %1429 = vmatmul.mubr.msk.f32.vlgmr.msra.gmra.mxu0 %vm311_vm6, %v303_v45  ;;  %1446 = vmatprep.subr.mxu1 %v1517_v0  ;;  %v306_v49 = vld [vmem:[#allocation2 + $0x18] sm:$0x1f]  ;;  %v308_v51 = vld [vmem:[#allocation2 + $0x28] sm:$0x1f] }
 0x19f   :  { %1432 = vmatpush3.xpose.msk.msra.mxu0 %vm311_vm6, %v304_v47  ;;  %1433 = vmatprep.mubr.msk.f32.mxu0 %vm1518_vm1, %v1517_v0  ;;  %v309_v50 = vld [vmem:[#allocation2 + $0x30] sm:$0x1f] }
 0x1a0   :  { %1439 = vmatmul.mubr.msk.f32.vlgmr.msra.gmra.mxu1 %vm311_vm6, %v305_v46  ;;  %1441 = vmatprep.subr.mxu0 %v1517_v0  ;;  %v310_v52 = vld [vmem:[#allocation2 + $0x38] sm:$0x1f] }
 0x1a1   :  { %1447 = vmatpush3.xpose.msk.msra.mxu1 %vm311_vm6, %v307_v48  ;;  %1448 = vmatprep.mubr.msk.f32.mxu1 %vm1518_vm1, %v1517_v0 }
 0x1a2   :  { %1434 = vmatmul.mubr.msk.f32.vlgmr.msra.gmra.mxu0 %vm311_vm6, %v304_v47  ;;  %1456 = vmatprep.subr.mxu1 %v1517_v0 }
 0x1a3   :  { %1442 = vmatpush3.xpose.msk.msra.mxu0 %vm311_vm6, %v306_v49  ;;  %1443 = vmatprep.mubr.msk.f32.mxu0 %vm1518_vm1, %v1517_v0 }
 0x1a4   :  { %1449 = vmatmul.mubr.msk.f32.vlgmr.msra.gmra.mxu1 %vm311_vm6, %v307_v48  ;;  %1451 = vmatprep.subr.mxu0 %v1517_v0 }
 0x1a5   :  { %1457 = vmatpush3.xpose.msk.msra.mxu1 %vm311_vm6, %v309_v50  ;;  %1458 = vmatprep.mubr.msk.f32.mxu1 %vm1518_vm1, %v1517_v0 }
 0x1a6   :  { %1444 = vmatmul.mubr.msk.f32.vlgmr.msra.gmra.mxu0 %vm311_vm6, %v306_v49  ;;  %1466 = vmatprep.subr.mxu1 %v1517_v0 }
 0x1a7   :  { %1452 = vmatpush3.xpose.msk.msra.mxu0 %vm311_vm6, %v308_v51  ;;  %1453 = vmatprep.mubr.msk.f32.mxu0 %vm1518_vm1, %v1517_v0 }
 0x1a8   :  { %1459 = vmatmul.mubr.msk.f32.vlgmr.msra.gmra.mxu1 %vm311_vm6, %v309_v50  ;;  %1461 = vmatprep.subr.mxu0 %v1517_v0 }
 0x1a9   :  { %1470 = vmatprep.mubr.msk.f32.mxu1 %vm1518_vm1, %v1517_v0  ;;  %1467 = vmatpush3.msk.msra.mxu1 %vm1001_vm14, %v996_v33 }
 0x1aa   :  { %1454 = vmatmul.mubr.msk.f32.vlgmr.msra.gmra.mxu0 %vm311_vm6, %v308_v51  ;;  %1468 = vmatprep.subr.mxu1 %v1517_v0 }
 0x1ab   :  { %1462 = vmatpush3.xpose.msk.msra.mxu0 %vm311_vm6, %v310_v52  ;;  %1463 = vmatprep.mubr.msk.f32.mxu0 %vm1518_vm1, %v1517_v0 }
 0x1ac   :  { %1473 = vmatprep.subr.mxu0 %v1517_v0  ;;  %1469 = vmatpush3.msra.mxu1 %v995_v34 }
 0x1ad   :  { %1480 = vmatprep.subr.mxu1 %v1517_v0 }
 0x1ae   :  { %1464 = vmatmul.mubr.msk.f32.vlgmr.msra.gmra.mxu0 %vm311_vm6, %v310_v52 }
 0x1af   :  { %1474 = vmatpush3.msra.mxu0 %v994_v53  ;;  %1477 = vmatprep.mubr.msk.f32.mxu0 %vm1518_vm1, %v1517_v0 }
 0x1b0   :  { %1475 = vmatprep.subr.mxu0 %v1517_v0 }
 0x1b1   :  { %1476 = vmatpush3.msra.mxu0 %v993_v54 }
 0x1b2   :  { %1478 = vmatmul.mubr.msk.f32.vlgmr.msra.gmra.mxu0 %vm311_vm6, %v1662_v31  ;;  %1499 = vmatprep.subr.mxu0 %v1517_v0  ;;  %vm958_vm6 = vcmask 91208  }
 0x1b3   :  { %1507 = vmatprep.mubr.msk.f32.mxu0 %vm1518_vm1, %v1517_v0 }
 0x25e   :  { %v1727_v55 = vpop.f32.mrf.mxu0 }
 0x260   :  { %v1430_v56 = vpop.f32.mrf.mxu0  ;;  %v527_v57 = vpop.f32.mrf.mxu1 }
 0x261   :  { %v907_v3 = vrot.slane %v527_v57, 6 }
 0x262   :  { %v454_v58 = vpop.f32.mrf.mxu0  ;;  %v1440_v59 = vpop.f32.mrf.mxu1 }
 0x263   :  { %v904_v60 = vrot.slane %v454_v58, 7  ;;  %v1163_v58 = vld [vmem:[%s1847_s9 + $0x38] sm:$0xff] }
 0x264   :  { %v1435_v61 = vpop.f32.mrf.mxu0  ;;  %v673_v62 = vpop.f32.mrf.mxu1 }
 0x265   :  { %v960_v63 = vsel %vm914_vm7, %v904_v60, %v1727_v55  ;;  %v944_v1 = vsel %vm911_vm8, %v904_v60, %v1727_v55  ;;  %v928_v2 = vsel %vm908_vm9, %v904_v60, %v1727_v55  ;;  %v906_v7 = vsel %vm905_vm10, %v904_v60, %v1727_v55  ;;  %v1161_v61 = vld [vmem:[%s1847_s9 + $0x28] sm:$0xff] }
 0x266   :  { %v600_v4 = vpop.f32.mrf.mxu0  ;;  %v1450_v5 = vpop.f32.mrf.mxu1  ;;  %v913_v8 = vrot.slane %v673_v62, 4  ;;  %v961_v11 = vsel %vm917_vm11, %v907_v3, %v960_v63  ;;  %v945_v12 = vsel %vm914_vm7, %v907_v3, %v944_v1  ;;  %v929_v13 = vsel %vm911_vm8, %v907_v3, %v928_v2  ;;  %v1160_v62 = vld [vmem:[%s1847_s9 + $0x20] sm:$0xff]  ;;  %v1159_v63 = vld [vmem:[%s1847_s9 + $0x18] sm:$0xff]  ;;  %v1158_v1 = vld [vmem:[%s1847_s9 + $0x10] sm:$0xff] }
 0x267   :  { %v910_v6 = vrot.slane %v600_v4, 5  ;;  %v909_v20 = vsel %vm908_vm9, %v907_v3, %v906_v7  ;;  %v976_v41 = vsel %vm917_vm11, %v904_v60, %v1727_v55  ;;  %v1162_v60 = vld [vmem:[%s1847_s9 + $0x30] sm:$0xff]  ;;  %v1157_v2 = vld [vmem:[%s1847_s9 + $0x8] sm:$0xff]  ;;  %v1249_v4 = vld [vmem:[%s1848_s11 + $0x18] sm:$0xff] }
 0x268   :  { %v1445_v9 = vpop.f32.mrf.mxu0  ;;  %v819_v10 = vpop.f32.mrf.mxu1  ;;  %v977_v45 = vsel %vm920_vm12, %v907_v3, %v976_v41  ;;  %v1156_v3 = vld [vmem:[%s1847_s9] sm:$0xff]  ;;  %1500 = vmatpush3.msra.mxu0 %v1249_v4 }
 0x269   :  { %v962_v14 = vsel %vm920_vm12, %v910_v6, %v961_v11  ;;  %v946_v15 = vsel %vm917_vm11, %v910_v6, %v945_v12  ;;  %v930_v16 = vsel %vm914_vm7, %v910_v6, %v929_v13  ;;  %v912_v22 = vsel %vm911_vm8, %v910_v6, %v909_v20  ;;  %1501 = vmatprep.subr.mxu0 %v1517_v0  ;;  %v1248_v11 = vld [vmem:[%s1848_s11 + $0x10] sm:$0xff]  ;;  %v1247_v12 = vld [vmem:[%s1848_s11 + $0x8] sm:$0xff]  ;;  %v1246_v13 = vld [vmem:[%s1848_s11] sm:$0xff] }
 0x26a   :  { %v746_v17 = vpop.f32.mrf.mxu0  ;;  %v1460_v18 = vpop.f32.mrf.mxu1  ;;  %v963_v19 = vsel %vm923_vm13, %v913_v8, %v962_v14  ;;  %v919_v23 = vrot.slane %v819_v10, 2  ;;  %v947_v25 = vsel %vm920_vm12, %v913_v8, %v946_v15  ;;  %v931_v26 = vsel %vm917_vm11, %v913_v8, %v930_v16  ;;  %1502 = vmatpush3.msra.mxu0 %v1248_v11  ;;  %v1360_v14 = vld [vmem:[%s1850_s10] ss:$0 sm:$0xff] }
 0x26b   :  { %v916_v21 = vrot.slane %v746_v17, 3  ;;  %966 = vrot.lane.b32.xlu0 %v963_v19, %s1520_s6  ;;  %v915_v29 = vsel %vm914_vm7, %v913_v8, %v912_v22  ;;  %v978_v47 = vsel %vm923_vm13, %v910_v6, %v977_v45  ;;  %vm974_vm7 = vcmask 108640   ;;  %v1359_v6 = vld [vmem:[%s1849_s8] ss:$0 sm:$0xff]  ;;  %1503 = vmatprep.subr.mxu0 %v1517_v0 }
 0x26c   :  { %v1455_v24 = vpop.f32.mrf.mxu0  ;;  %1504 = vmatpush3.msra.mxu0 %v1247_v12  ;;  %v1362_v19 = vld [vmem:[%s1851_s12] ss:$0 sm:$0xff] }
 0x26d   :  { %v948_v27 = vsel %vm923_vm13, %v916_v21, %v947_v25  ;;  %v932_v28 = vsel %vm920_vm12, %v916_v21, %v931_v26  ;;  %v918_v32 = vsel %vm917_vm11, %v916_v21, %v915_v29  ;;  %v964_v43 = vsel %vm905_vm10, %v919_v23, %v916_v21  ;;  %1505 = vmatprep.subr.mxu0 %v1517_v0 }
 0x26e   :  { %950 = vrot.lane.b32.xlu1 %v948_v27, %s1521_s21  ;;  %v892_v30 = vpop.f32.mrf.mxu0  ;;  %v933_v31 = vsel %vm923_vm13, %v919_v23, %v932_v28  ;;  %v921_v37 = vsel %vm920_vm12, %v919_v23, %v918_v32  ;;  %v979_v46 = vsel %vm905_vm10, %v916_v21, %v913_v8  ;;  %1506 = vmatpush3.msra.mxu0 %v1246_v13 }
 0x26f   :  { %v922_v35 = vrot.slane %v892_v30, 1  ;;  %934 = vrot.lane.b32.xlu0 %v933_v31, %s1522_s3  ;;  %v980_v48 = vsel %vm908_vm9, %v919_v23, %v979_v46 }
 0x270   :  { %v1465_v36 = vpop.f32.mrf.mxu0 }
 0x271   :  { %v949_v38 = vsel %vm905_vm10, %v922_v35, %v919_v23  ;;  %v924_v39 = vsel %vm923_vm13, %v922_v35, %v921_v37  ;;  %v965_v44 = vsel %vm908_vm9, %v922_v35, %v964_v43  ;;  %v981_v49 = vsel %vm911_vm8, %v922_v35, %v980_v48 }
 0x272   :  { %952 = vrot.lane.b32.xlu1 %v949_v38, %s1521_s21  ;;  %v1764_v40 = vpop.f32.mrf.mxu0  ;;  %927 = vst.msk [vmem:[#allocation3] sm:$0xff] %vm926_vm15, %v924_v39  ;;  %vm988_vm9 = vcmask 121972   ;;  %vm990_vm8 = vcmask 117872   ;;  %vm997_vm10 = vcmask 121856  }
 0x273   :  { %936 = vrot.lane.b32.xlu0 %v922_v35, %s1522_s3 }
 0x274   :  { %v1479_v42 = vpop.f32.mrf.mxu0 }
 0x276   :  { %968 = vrot.lane.b32.xlu1 %v965_v44, %s1520_s6 }
 0x277   :  { %982 = vrot.lane.b32.xlu0 %v978_v47, %s1523_s7 }
 0x27a   :  { %984 = vrot.lane.b32.xlu1 %v981_v49, %s1523_s7 }
 0x2dd   :  { %v967_v50 = vpop.permute.xlu0 %966 }
 0x2e0   :  { %v951_v51 = vpop.permute.xlu1 %950 }
 0x2e1   :  { %v935_v52 = vpop.permute.xlu0 %934 }
 0x2e2   :  { %941 = vst.msk [vmem:[#allocation3 - $0x1] sm:$0xfe] %vm940_vm0, %v935_v52 }
 0x2e3   :  { %957 = vst.msk [vmem:[#allocation3 - $0x2] sm:$0xfc] %vm956_vm2, %v951_v51 }
 0x2e4   :  { %v953_v53 = vpop.permute.xlu1 %952  ;;  %973 = vst.msk [vmem:[#allocation3 - $0x3] sm:$0xf8] %vm972_vm4, %v967_v50 }
 0x2e5   :  { %v937_v54 = vpop.permute.xlu0 %936 }
 0x2e6   :  { %943 = vst.msk [vmem:[#allocation3 + $0x7] sm:$0x1] %vm942_vm5, %v937_v54 }
 0x2e7   :  { %959 = vst.msk [vmem:[#allocation3 + $0x6] sm:$0x3] %vm958_vm6, %v953_v53 }
 0x2e8   :  { %v969_v55 = vpop.permute.xlu1 %968 }
 0x2e9   :  { %975 = vst.msk [vmem:[#allocation3 + $0x5] sm:$0x7] %vm974_vm7, %v969_v55  ;;  %v983_v56 = vpop.permute.xlu0 %982 }
 0x2ea   :  { %989 = vst.msk [vmem:[#allocation3 - $0x4] sm:$0xf0] %vm988_vm9, %v983_v56 }
 0x2ec   :  { %v985_v57 = vpop.permute.xlu1 %984 }
 0x2ed   :  { %991 = vst.msk [vmem:[#allocation3 + $0x4] sm:$0xf] %vm990_vm8, %v985_v57 }
 0x2f4   :  { %v992_v59 = vld [vmem:[#allocation3] sm:$0xff] }
 0x2f5   :  { %1471 = vmatmul.mubr.msk.f32.vlgmr.msra.gmra.mxu1 %vm997_vm10, %v992_v59 }
 0x2f6   :  { %1481 = vmatpush3.msra.mxu1 %v1163_v58  ;;  %1496 = vmatprep.mubr.msk.f32.mxu1 %vm1518_vm1, %v1517_v0  ;;  %vm1171_vm1 = vcmask 523264  }
 0x2f7   :  { %1482 = vmatprep.subr.mxu1 %v1517_v0 }
 0x2f8   :  { %1483 = vmatpush3.msra.mxu1 %v1162_v60 }
 0x2f9   :  { %1484 = vmatprep.subr.mxu1 %v1517_v0 }
 0x2fa   :  { %1485 = vmatpush3.msra.mxu1 %v1161_v61 }
 0x2fb   :  { %1486 = vmatprep.subr.mxu1 %v1517_v0 }
 0x2fc   :  { %1487 = vmatpush3.msra.mxu1 %v1160_v62 }
 0x2fd   :  { %1488 = vmatprep.subr.mxu1 %v1517_v0 }
 0x2fe   :  { %1489 = vmatpush3.msra.mxu1 %v1159_v63 }
 0x2ff   :  { %1490 = vmatprep.subr.mxu1 %v1517_v0 }
 0x300   :  { %1491 = vmatpush3.msra.mxu1 %v1158_v1 }
 0x301   :  { %1492 = vmatprep.subr.mxu1 %v1517_v0 }
 0x302   :  { %1493 = vmatpush3.msra.mxu1 %v1157_v2 }
 0x303   :  { %1494 = vmatprep.subr.mxu1 %v1517_v0 }
 0x304   :  { %1495 = vmatpush3.msra.mxu1 %v1156_v3 }
 0x3b5   :  { %v1071_v5 = vpop.f32.mrf.mxu1 }
 0x3b6   :  { %v1144_v7 = vadd.f32 %v1764_v40, %v1071_v5 }
 0x3b7   :  { %v1472_v8 = vpop.f32.mrf.mxu1 }
 0x3b8   :  { %v1154_v9 = vadd.f32 %v1359_v6, %v1144_v7 }
 0x3ba   :  { %v1155_v10 = vmax.f32 %v1154_v9, 0.0 }
 0x3bc   :  { %1497 = vmatmul.mubr.msk.f32.vlgmr.msra.gmra.mxu1 %vm1171_vm1, %v1155_v10 }
 0x47c   :  { %v1241_v15 = vpop.f32.mrf.mxu1 }
 0x47d   :  { %v1242_v16 = vadd.f32 %v1360_v14, %v1241_v15 }
 0x47e   :  { %v1498_v17 = vpop.f32.mrf.mxu1 }
 0x47f   :  { %v1245_v18 = vmax.f32 %v1242_v16, 0.0 }
 0x481   :  { %1508 = vmatmul.mubr.msk.f32.vlgmr.msra.gmra.mxu0 %vm144_vm3, %v1245_v18 }
 0x541   :  { %v1326_v20 = vpop.f32.mrf.mxu0 }
 0x542   :  { %v1327_v21 = vadd.f32 %v1362_v19, %v1326_v20 }
 0x543   :  { %v1509_v22 = vpop.f32.mrf.mxu0 }
 0x544   :  { %1330 = vst [vmem:[%s1852_s13] sm:$0xff] %v1327_v21 }

</bundles_post_ra>
